<compile_context>
chip_gen: v5e
topology: v5e:2x2
jax: 0.10.0
libtpu: 0.0.40
codegen_flags: <defaults>
</compile_context>

<pallas_src>
import functools

import jax
import jax.numpy as jnp
from jax.experimental import pallas as pl
from jax.experimental.pallas import tpu as pltpu


def _vmem_capacity_bytes() -> int:
    """Physical VMEM per TensorCore; conservative fallback = v7x (64 MiB)."""
    try:
        return int(pltpu.get_tpu_info().vmem_capacity_bytes)
    except Exception:
        return 64 << 20


def _pick_hw_tile(hw: int, itemsize: int, target_bytes: int, max_hw_tile) -> int:
    """Lane-axis chunk: the full HW when it fits, else a multiple of 128."""
    cap = hw if max_hw_tile is None else max(1, min(hw, int(max_hw_tile)))
    # Whole reduction axis in one chunk whenever even a minimal 32-row tile fits.
    if cap >= hw and 32 * hw * itemsize <= target_bytes:
        return hw
    if hw <= 128:
        return hw  # cannot usefully split below one vreg lane width
    t = min(cap, max(target_bytes // (256 * itemsize), 128))
    return max((t // 128) * 128, 128)


def _pick_row_tile(nc: int, hw_tile: int, itemsize: int, target_bytes: int) -> int:
    """Sublane-axis tile: VMEM-budgeted, multiple of 32, >=2 grid steps when NC>=64."""
    rt = max(((target_bytes // max(hw_tile * itemsize, 1)) // 32) * 32, 32)
    if rt >= nc:
        if nc >= 64:
            # Split into >= 2 balanced blocks so the DMA pipeline overlaps and
            # both v7x TensorCores get grid steps (no-op on single-TC chips).
            half = (nc + 1) // 2
            return ((half + 31) // 32) * 32
        return nc  # single block equal to the full row dim (always legal)
    num_blocks = pl.cdiv(nc, rt)
    balanced = pl.cdiv(nc, num_blocks)  # minimize last-block raggedness
    return ((balanced + 31) // 32) * 32


def _gem_kernel(scal_ref, flag_ref, x_ref, o_ref, acc_ref, *,
                eps: float, hw: int, hw_tile: int, needs_mask: bool):
    # scal_ref: SMEM f32 (2,) = [p, 1/p]
    # flag_ref: SMEM i32 (2,) = [use_int_fast_path, round(p)]
    # x_ref:    VMEM (row_tile, hw_tile)
    # o_ref:    VMEM (row_tile, 1)
    # acc_ref:  VMEM f32 (row_tile, 1) running sum of x**p over HW chunks
    j = pl.program_id(1)

    @pl.when(j == 0)
    def _init():
        acc_ref[...] = jnp.zeros_like(acc_ref)

    x = x_ref[...].astype(jnp.float32)
    xc = jnp.maximum(x, eps)  # clamp(min=eps); eps > 0 keeps log() safe

    if needs_mask:
        # Ragged last HW chunk: zero out lanes past the true spatial extent so
        # garbage never enters the row sum.
        col = jax.lax.broadcasted_iota(jnp.int32, xc.shape, 1)
        valid = (j * hw_tile + col) < hw
    else:
        valid = None

    def _accumulate(xp):
        if valid is not None:
            xp = jnp.where(valid, xp, 0.0)
        acc_ref[...] += jnp.sum(xp, axis=-1, keepdims=True)  # XLU cross-lane sum

    use_fast = flag_ref[0] == 1
    n = flag_ref[1]
    p = scal_ref[0]

    # Integer-p fast path (VPU multiply chain) for the common GeM exponents.
    @pl.when(jnp.logical_and(use_fast, n == 2))
    def _pow2():
        _accumulate(xc * xc)

    @pl.when(jnp.logical_and(use_fast, n == 3))
    def _pow3():
        _accumulate(xc * xc * xc)

    # Generic non-integer p: 2 EUP transcendentals / element.
    @pl.when(jnp.logical_not(use_fast))
    def _pow_generic():
        _accumulate(jnp.exp(p * jnp.log(xc)))

    @pl.when(j == pl.num_programs(1) - 1)
    def _finalize():
        inv_p = scal_ref[1]
        m = acc_ref[...] * (1.0 / hw)                 # static scale: VPU mul, no divide
        o_ref[...] = jnp.exp(inv_p * jnp.log(m)).astype(o_ref.dtype)  # one EUP op per row


def gem_pallas(x: jax.Array, p, eps: float = 1e-6, *, max_hw_tile=None) -> jax.Array:
    """x: (N, C, H, W); p: scalar / (1,) float parameter. Returns (N, C, 1, 1)."""
    if not eps > 0.0:
        raise ValueError("gem_pallas requires eps > 0 (the clamp feeds a log()).")
    N, C, H, W = x.shape
    NC, HW = N * C, H * W
    x2d = x.reshape(NC, HW)
    itemsize = x2d.dtype.itemsize

    # VMEM-budgeted tile sizing, per generation (v7x 64 MiB, v5e/v6e 128 MiB).
    # Element budget assumes 2 double-buffered input tiles + ~5 f32 temporaries.
    cap = _vmem_capacity_bytes()
    budget = max(int(cap * 3 // 4) - (2 << 20), 8 << 20)
    max_elems = min(max(budget // (2 * itemsize + 20), 1 << 18), 4 << 20)
    target_bytes = max_elems * itemsize

    hw_tile = _pick_hw_tile(HW, itemsize, target_bytes, max_hw_tile)
    row_tile = _pick_row_tile(NC, hw_tile, itemsize, target_bytes)
    grid = (pl.cdiv(NC, row_tile), pl.cdiv(HW, hw_tile))
    needs_mask = (HW % hw_tile) != 0

    # Scalars -> SMEM: [p, 1/p] and the integer-fast-path dispatch flags.
    p_scalar = jnp.asarray(p, jnp.float32).reshape(())
    scal = jnp.stack([p_scalar, 1.0 / p_scalar])
    p_round = jnp.round(p_scalar)
    n_int = p_round.astype(jnp.int32)
    use_fast = jnp.logical_and(jnp.abs(p_scalar - p_round) < 1e-6,
                               jnp.logical_or(n_int == 2, n_int == 3))
    flags = jnp.stack([use_fast.astype(jnp.int32), n_int])

    kernel = functools.partial(_gem_kernel, eps=float(eps), hw=HW,
                               hw_tile=hw_tile, needs_mask=needs_mask)

    out2d = pl.pallas_call(
        kernel,
        out_shape=jax.ShapeDtypeStruct((NC, 1), x.dtype),
        grid=grid,
        in_specs=[
            pl.BlockSpec(memory_space=pltpu.MemorySpace.SMEM),   # [p, 1/p]
            pl.BlockSpec(memory_space=pltpu.MemorySpace.SMEM),   # [use_fast, round(p)]
            pl.BlockSpec((row_tile, hw_tile), lambda i, j: (i, j)),
        ],
        out_specs=pl.BlockSpec((row_tile, 1), lambda i, j: (i, 0)),
        scratch_shapes=[pltpu.VMEM((row_tile, 1), jnp.float32)],
        compiler_params=pltpu.CompilerParams(
            # Row axis parallel (v7x 2-TC sharding); HW reduction axis last, arbitrary.
            dimension_semantics=("parallel", "arbitrary"),
            vmem_limit_bytes=int(max(cap * 3 // 4, 32 << 20)),
        ),
    )(scal, flags, x2d)

    return out2d.reshape(N, C, 1, 1)


def gem_reference(x, p, eps=1e-6):
    xc = jnp.maximum(x.astype(jnp.float32), eps)
    m = jnp.mean(xc ** p, axis=(-2, -1), keepdims=True)
    return (m ** (1.0 / p)).astype(x.dtype)


if __name__ == "__main__":
    key = jax.random.PRNGKey(0)

    # Primary case matching GeM defaults: p = 3 (integer VPU fast path).
    N, C, H, W = 2, 4, 16, 16
    x = jax.random.uniform(key, (N, C, H, W), dtype=jnp.float32)
    p = jnp.ones((1,), dtype=jnp.float32) * 3.0

    y = gem_pallas(x, p, eps=1e-6)
    jax.block_until_ready(y)
    y_ref = gem_reference(x, p[0], eps=1e-6)
    assert y.shape == (N, C, 1, 1)
    assert jnp.allclose(y, y_ref, rtol=1e-4, atol=1e-5), "p=3 fast path mismatch"

    # Non-integer p exercises the generic exp/log branch (same compiled kernel).
    p_frac = jnp.ones((1,), dtype=jnp.float32) * 2.5
    y2 = gem_pallas(x, p_frac, eps=1e-6)
    y2_ref = gem_reference(x, p_frac[0], eps=1e-6)
    assert jnp.allclose(y2, y2_ref, rtol=1e-4, atol=1e-5), "generic path mismatch"

    # Ragged NC (does not divide the row tile): masked partial blocks, no jnp.pad.
    x3 = jax.random.uniform(jax.random.PRNGKey(1), (2, 37, 8, 8), dtype=jnp.float32)
    y3 = gem_pallas(x3, p, eps=1e-6)
    y3_ref = gem_reference(x3, p[0], eps=1e-6)
    assert y3.shape == (2, 37, 1, 1)
    assert jnp.allclose(y3, y3_ref, rtol=1e-4, atol=1e-5), "ragged-row path mismatch"

    # Split reduction axis (HW chunking + ragged lane masking), forced via max_hw_tile.
    x4 = jax.random.uniform(jax.random.PRNGKey(2), (2, 4, 16, 20), dtype=jnp.float32)
    y4 = gem_pallas(x4, p, eps=1e-6, max_hw_tile=128)
    y4_ref = gem_reference(x4, p[0], eps=1e-6)
    assert jnp.allclose(y4, y4_ref, rtol=1e-4, atol=1e-5), "hw-split path mismatch"

    print("KERNEL_OK")
</pallas_src>

<mosaic_0001>
module attributes {stable_mosaic.version = 11 : i64} {
  func.func @_gem_kernel(%arg0: i32, %arg1: i32, %arg2: memref<2xf32, #tpu.memory_space<smem>>, %arg3: memref<2xi32, #tpu.memory_space<smem>>, %arg4: memref<8x256xf32, #tpu.memory_space<vmem>>, %arg5: memref<8x1xf32, #tpu.memory_space<vmem>>, %arg6: memref<8x1xf32, #tpu.memory_space<vmem>>) attributes {dimension_semantics = [#tpu.dimension_semantics<parallel>, #tpu.dimension_semantics<arbitrary>], iteration_bounds = array<i64: 1, 1>, scalar_prefetch = 0 : i64, scratch_operands = 1 : i64, tpu.core_type = #tpu.core_type<tc>, window_params = [{transform_indices = @transform_0, window_bounds = array<i64: 2>}, {transform_indices = @transform_1, window_bounds = array<i64: 2>}, {transform_indices = @transform_2, window_bounds = array<i64: 8, 256>}, {transform_indices = @transform_3, window_bounds = array<i64: 8, 1>}]} {
    %c0_i32 = arith.constant 0 : i32
    %0 = arith.cmpi eq, %arg1, %c0_i32 : i32
    %1 = arith.extui %0 : i1 to i32
    %c0_i32_0 = arith.constant 0 : i32
    %2 = arith.cmpi ne, %1, %c0_i32_0 : i32
    scf.if %2 {
      %cst_9 = arith.constant 0.000000e+00 : f32
      %24 = vector.broadcast %cst_9 : f32 to vector<8x1xf32>
      %c0_10 = arith.constant 0 : index
      %c0_11 = arith.constant 0 : index
      %25 = vector.load %arg6[%c0_10, %c0_11] : memref<8x1xf32, #tpu.memory_space<vmem>>, vector<8x1xf32>
      tpu.vector_store %arg6[%c0_10, %c0_11], %24 {strides = array<i32>} : memref<8x1xf32, #tpu.memory_space<vmem>>, vector<8x1xf32>,
    } else {
    }
    %c0 = arith.constant 0 : index
    %c0_1 = arith.constant 0 : index
    %3 = vector.load %arg4[%c0, %c0_1] : memref<8x256xf32, #tpu.memory_space<vmem>>, vector<8x256xf32>
    %cst = arith.constant 9.99999997E-7 : f32
    %4 = vector.broadcast %cst : f32 to vector<8x256xf32>
    %5 = arith.maximumf %3, %4 : vector<8x256xf32>
    %c0_2 = arith.constant 0 : index
    %6 = memref.load %arg3[%c0_2] : memref<2xi32, #tpu.memory_space<smem>>
    %c1_i32 = arith.constant 1 : i32
    %7 = arith.cmpi eq, %6, %c1_i32 : i32
    %c1 = arith.constant 1 : index
    %8 = memref.load %arg3[%c1] : memref<2xi32, #tpu.memory_space<smem>>
    %c0_3 = arith.constant 0 : index
    %9 = memref.load %arg2[%c0_3] : memref<2xf32, #tpu.memory_space<smem>>
    %c2_i32 = arith.constant 2 : i32
    %10 = arith.cmpi eq, %8, %c2_i32 : i32
    %11 = arith.andi %7, %10 : i1
    %12 = arith.extui %11 : i1 to i32
    %c0_i32_4 = arith.constant 0 : i32
    %13 = arith.cmpi ne, %12, %c0_i32_4 : i32
    scf.if %13 {
      %24 = arith.mulf %5, %5 : vector<8x256xf32>
      %c0_9 = arith.constant 0 : index
      %c0_10 = arith.constant 0 : index
      %25 = vector.load %arg6[%c0_9, %c0_10] : memref<8x1xf32, #tpu.memory_space<vmem>>, vector<8x1xf32>
      %cst_11 = arith.constant dense<0.000000e+00> : vector<8xf32>
      %26 = vector.multi_reduction <add>, %24, %cst_11 [1] : vector<8x256xf32> to vector<8xf32>
      %27 = vector.shape_cast %26 : vector<8xf32> to vector<8x1xf32>
      %28 = arith.addf %25, %27 : vector<8x1xf32>
      %c0_12 = arith.constant 0 : index
      %c0_13 = arith.constant 0 : index
      %29 = vector.load %arg6[%c0_12, %c0_13] : memref<8x1xf32, #tpu.memory_space<vmem>>, vector<8x1xf32>
      tpu.vector_store %arg6[%c0_12, %c0_13], %28 {strides = array<i32>} : memref<8x1xf32, #tpu.memory_space<vmem>>, vector<8x1xf32>,
    } else {
    }
    %c3_i32 = arith.constant 3 : i32
    %14 = arith.cmpi eq, %8, %c3_i32 : i32
    %15 = arith.andi %7, %14 : i1
    %16 = arith.extui %15 : i1 to i32
    %c0_i32_5 = arith.constant 0 : i32
    %17 = arith.cmpi ne, %16, %c0_i32_5 : i32
    scf.if %17 {
      %24 = arith.mulf %5, %5 : vector<8x256xf32>
      %25 = arith.mulf %24, %5 : vector<8x256xf32>
      %c0_9 = arith.constant 0 : index
      %c0_10 = arith.constant 0 : index
      %26 = vector.load %arg6[%c0_9, %c0_10] : memref<8x1xf32, #tpu.memory_space<vmem>>, vector<8x1xf32>
      %cst_11 = arith.constant dense<0.000000e+00> : vector<8xf32>
      %27 = vector.multi_reduction <add>, %25, %cst_11 [1] : vector<8x256xf32> to vector<8xf32>
      %28 = vector.shape_cast %27 : vector<8xf32> to vector<8x1xf32>
      %29 = arith.addf %26, %28 : vector<8x1xf32>
      %c0_12 = arith.constant 0 : index
      %c0_13 = arith.constant 0 : index
      %30 = vector.load %arg6[%c0_12, %c0_13] : memref<8x1xf32, #tpu.memory_space<vmem>>, vector<8x1xf32>
      tpu.vector_store %arg6[%c0_12, %c0_13], %29 {strides = array<i32>} : memref<8x1xf32, #tpu.memory_space<vmem>>, vector<8x1xf32>,
    } else {
    }
    %true = arith.constant true
    %18 = arith.xori %7, %true : i1
    %19 = arith.extui %18 : i1 to i32
    %c0_i32_6 = arith.constant 0 : i32
    %20 = arith.cmpi ne, %19, %c0_i32_6 : i32
    scf.if %20 {
      %24 = math.log %5 : vector<8x256xf32>
      %25 = vector.broadcast %9 : f32 to vector<8x256xf32>
      %26 = arith.mulf %25, %24 : vector<8x256xf32>
      %27 = math.exp %26 : vector<8x256xf32>
      %c0_9 = arith.constant 0 : index
      %c0_10 = arith.constant 0 : index
      %28 = vector.load %arg6[%c0_9, %c0_10] : memref<8x1xf32, #tpu.memory_space<vmem>>, vector<8x1xf32>
      %cst_11 = arith.constant dense<0.000000e+00> : vector<8xf32>
      %29 = vector.multi_reduction <add>, %27, %cst_11 [1] : vector<8x256xf32> to vector<8xf32>
      %30 = vector.shape_cast %29 : vector<8xf32> to vector<8x1xf32>
      %31 = arith.addf %28, %30 : vector<8x1xf32>
      %c0_12 = arith.constant 0 : index
      %c0_13 = arith.constant 0 : index
      %32 = vector.load %arg6[%c0_12, %c0_13] : memref<8x1xf32, #tpu.memory_space<vmem>>, vector<8x1xf32>
      tpu.vector_store %arg6[%c0_12, %c0_13], %31 {strides = array<i32>} : memref<8x1xf32, #tpu.memory_space<vmem>>, vector<8x1xf32>,
    } else {
    }
    %c0_i32_7 = arith.constant 0 : i32
    %21 = arith.cmpi eq, %arg1, %c0_i32_7 : i32
    %22 = arith.extui %21 : i1 to i32
    %c0_i32_8 = arith.constant 0 : i32
    %23 = arith.cmpi ne, %22, %c0_i32_8 : i32
    scf.if %23 {
      %c1_9 = arith.constant 1 : index
      %24 = memref.load %arg2[%c1_9] : memref<2xf32, #tpu.memory_space<smem>>
      %c0_10 = arith.constant 0 : index
      %c0_11 = arith.constant 0 : index
      %25 = vector.load %arg6[%c0_10, %c0_11] : memref<8x1xf32, #tpu.memory_space<vmem>>, vector<8x1xf32>
      %cst_12 = arith.constant 3.906250e-03 : f32
      %26 = vector.broadcast %cst_12 : f32 to vector<8x1xf32>
      %27 = arith.mulf %25, %26 : vector<8x1xf32>
      %28 = math.log %27 : vector<8x1xf32>
      %29 = vector.broadcast %24 : f32 to vector<8x1xf32>
      %30 = arith.mulf %29, %28 : vector<8x1xf32>
      %31 = math.exp %30 : vector<8x1xf32>
      %c0_13 = arith.constant 0 : index
      %c0_14 = arith.constant 0 : index
      %32 = vector.load %arg5[%c0_13, %c0_14] : memref<8x1xf32, #tpu.memory_space<vmem>>, vector<8x1xf32>
      tpu.vector_store %arg5[%c0_13, %c0_14], %31 {strides = array<i32>} : memref<8x1xf32, #tpu.memory_space<vmem>>, vector<8x1xf32>,
    } else {
    }
    return
  }
  func.func @transform_0(%arg0: i32, %arg1: i32) -> i32 {
    %c0_i32 = arith.constant 0 : i32
    %c0_i32_0 = arith.constant 0 : i32
    return %c0_i32 : i32
  }
  func.func @transform_1(%arg0: i32, %arg1: i32) -> i32 {
    %c0_i32 = arith.constant 0 : i32
    %c0_i32_0 = arith.constant 0 : i32
    return %c0_i32 : i32
  }
  func.func @transform_2(%arg0: i32, %arg1: i32) -> (i32, i32) {
    %c0_i32 = arith.constant 0 : i32
    return %arg0, %arg1 : i32, i32
  }
  func.func @transform_3(%arg0: i32, %arg1: i32) -> (i32, i32) {
    %c0_i32 = arith.constant 0 : i32
    %c0_i32_0 = arith.constant 0 : i32
    return %arg0, %c0_i32 : i32, i32
  }
}

</mosaic_0001>

<bundles_post_ra>
// kernel: tpu_custom_call.1
= control target key start
LH: loop header
LB: loop body
LE: loop exit
PB: predicated region body
PF: predicated region fallthrough
CT: control target
= control target key end

     0   :  { %8 = vsyncpa [#allocation5], 0  ;;  %s266_s0 = inlined_call_operand.hbm [shape: f32[2], index: 0, kind: input, shape index: {}]   ;;  %s267_s1 = inlined_call_operand.hbm [shape: s32[2], index: 1, kind: input, shape index: {}]   ;;  %s268_s2 = inlined_call_operand.hbm [shape: f32[8,256], index: 2, kind: input, shape index: {}]   ;;  %s269_s3 = inlined_call_operand.vmem [shape: f32[8,1], index: 3, kind: output, shape index: {}]  }
   0x1   :  { %9 = vsyncpa [#allocation7], 0  ;;  %s16_s14 = sshll.u32 %s266_s0, 4  ;;  %s17_s14 = int_to_ptr.hbm [resolvable:$true] %s16_s14 }
   0x2   :  { %10 = vsyncpa [#allocation4], 0  ;;  %s25_s17 = sshll.u32 %s267_s1, 4  ;;  %s213_s18 = smov [#allocation3]   ;;  %s26_s17 = int_to_ptr.hbm [resolvable:$true] %s25_s17 }
   0x3   :  { %19 = dma.hbm_to_smem %s17_s14, 16, %s213_s18, [#allocation5]  }
   0x4   :  { %s214_s19 = smov [#allocation6]   ;;  %s34_s22 = sshll.u32 %s268_s2, 4  ;;  %s35_s22 = int_to_ptr.hbm [resolvable:$true] %s34_s22 }
   0x5   :  { %28 = dma.hbm_to_smem %s26_s17, 16, %s214_s19, [#allocation7]  }
   0x6   :  { %s215_s23 = smov [#allocation8]  }
   0x7   :  { %s36_s24 = sshll.u32 %s215_s23, 4  ;;  %s37_s24 = int_to_ptr.vmem [resolvable:$true] %s36_s24 }
   0x8   :  { %39 = dma.hbm_to_vmem [thread:$0]  %s35_s22, 256, %s37_s24, [#allocation4]  }
   0x9   :  { %207 = dma.done.wait [#allocation5], 16  }
   0xa   :  { %208 = vsyncadd [#allocation5], 4294967280 }
   0xb   :  { %209 = dma.done.wait [#allocation7], 16  }
   0xc   :  { %210 = vsyncadd [#allocation7], 4294967280 }
   0xd   :  { %211 = dma.done.wait [#allocation4], 256  }
   0xe   :  { %212 = vsyncadd [#allocation4], 4294967040 }
   0xf   :  { %52 = sfence }
  0x10   :  { %vm57_vm0 = vcmask 7168   ;;  %v59_v0 = vld [vmem:[#allocation8] sm:$0xff]  ;;  %v60_v1 = vld [vmem:[#allocation8 + $0x8] sm:$0xff]  ;;  %s246_s0 = sld [smem:[#allocation6]]  ;;  %v216_v2 = vmov 0.0  }
  0x11   :  { %58 = vst.msk [vmem:[#allocation2] sm:$0xff] %vm57_vm0, %v216_v2  ;;  %v61_v3 = vmax.f32 %v59_v0, 1e-06  ;;  %v62_v4 = vmax.f32 %v60_v1, 1e-06  ;;  %s140_s1 = sld [smem:[#allocation6 + $0x1]] }
  0x12   :  { %s249_s2 = sld [smem:[#allocation3]] }
  0x16   :  { %p64_p0 = scmp.eq.s32.totalorder %s246_s0, 1 }
  0x17   :  { %p67_p1 = scmp.eq.s32.totalorder %s140_s1, 2 }
  0x19   :  { %p68_p2 = pnand %p67_p1, %p64_p0 }
  0x1b   :  { %71 = sbr.rel (%p68_p2) target bundleno = 155 (0x9b), region = 33 }
  0x20   :  { %v72_v5 = vmul.f32 %v61_v3, %v61_v3  ;;  %v73_v6 = vmul.f32 %v62_v4, %v62_v4  ;;  %v74_v8 = vld [vmem:[#allocation2] sm:$0xff] }
  0x22   :  { %v75_v7 = vadd.f32 %v73_v6, %v72_v5 }
  0x24   :  { %76 = vadd.xlane.f32.xlu0 %v75_v7 }
  0x97   :  { %v77_v9 = vpop.xlane.xlu0 %76 }
  0x98   :  { %v78_v10 = vadd.f32 %v77_v9, %v74_v8 }
  0x9a   :  { %80 = vst.msk [vmem:[#allocation2] sm:$0xff] %vm57_vm0, %v78_v10 }
  0x9b PF:  { %p81_p3 = scmp.eq.s32.totalorder %s140_s1, 3 }
  0x9d   :  { %p82_p4 = pnand %p81_p3, %p64_p0 }
  0x9f   :  { %85 = sbr.rel (%p82_p4) target bundleno = 289 (0x121), region = 37 }
  0xa4   :  { %v86_v11 = vmul.f32 %v61_v3, %v61_v3  ;;  %v87_v12 = vmul.f32 %v62_v4, %v62_v4  ;;  %v90_v16 = vld [vmem:[#allocation2] sm:$0xff] }
  0xa6   :  { %v88_v13 = vmul.f32 %v86_v11, %v61_v3  ;;  %v89_v14 = vmul.f32 %v87_v12, %v62_v4 }
  0xa8   :  { %v91_v15 = vadd.f32 %v89_v14, %v88_v13 }
  0xaa   :  { %92 = vadd.xlane.f32.xlu0 %v91_v15 }
 0x11d   :  { %v93_v17 = vpop.xlane.xlu0 %92 }
 0x11e   :  { %v94_v18 = vadd.f32 %v93_v17, %v90_v16 }
 0x120   :  { %96 = vst.msk [vmem:[#allocation2] sm:$0xff] %vm57_vm0, %v94_v18 }
 0x121 PF:  { %100 = sbr.rel (%p64_p0) target bundleno = 436 (0x1b4), region = 41 }
 0x126   :  { %147 = vlog2.f32 %v61_v3  ;;  %v105_v20 = vstv %s249_s2 }
 0x127   :  { %149 = vlog2.f32 %v62_v4  ;;  %v112_v31 = vld [vmem:[#allocation2] sm:$0xff] }
 0x12c   :  { %v148_v19 = vpop.eup %147 }
 0x12d   :  { %v150_v21 = vpop.eup %149  ;;  %v102_v22 = vmul.f32 0.6931472, %v148_v19 }
 0x12e   :  { %v104_v23 = vmul.f32 0.6931472, %v150_v21 }
 0x12f   :  { %v106_v24 = vmul.f32 %v105_v20, %v102_v22 }
 0x130   :  { %v107_v25 = vmul.f32 %v105_v20, %v104_v23 }
 0x131   :  { %v108_v26 = vmul.f32 1.442695, %v106_v24 }
 0x132   :  { %v110_v27 = vmul.f32 1.442695, %v107_v25 }
 0x133   :  { %151 = vpow2.f32 %v108_v26 }
 0x134   :  { %153 = vpow2.f32 %v110_v27 }
 0x139   :  { %v152_v28 = vpop.eup %151 }
 0x13a   :  { %v154_v29 = vpop.eup %153 }
 0x13b   :  { %v113_v30 = vadd.f32 %v154_v29, %v152_v28 }
 0x13d   :  { %114 = vadd.xlane.f32.xlu0 %v113_v30 }
 0x1b0   :  { %v115_v32 = vpop.xlane.xlu0 %114 }
 0x1b1   :  { %v116_v33 = vadd.f32 %v115_v32, %v112_v31 }
 0x1b3   :  { %118 = vst.msk [vmem:[#allocation2] sm:$0xff] %vm57_vm0, %v116_v33 }
 0x1b4 PF:  { %s142_s25 = sld [smem:[#allocation3 + $0x1]] }
 0x1ba   :  { %v123_v34 = vld [vmem:[#allocation2] sm:$0xff]  ;;  %v127_v37 = vstv %s142_s25 }
 0x1bb   :  { %v124_v35 = vmul.f32 0.00390625, %v123_v34 }
 0x1bd   :  { %155 = vlog2.f32 %v124_v35 }
 0x1c3   :  { %v156_v36 = vpop.eup %155 }
 0x1c4   :  { %v126_v38 = vmul.f32 0.6931472, %v156_v36 }
 0x1c6   :  { %v128_v39 = vmul.f32 %v127_v37, %v126_v38 }
 0x1c8   :  { %v129_v40 = vmul.f32 1.442695, %v128_v39 }
 0x1ca   :  { %157 = vpow2.f32 %v129_v40 }
 0x1d0   :  { %v158_v41 = vpop.eup %157 }
 0x1d1   :  { %132 = vst.msk [vmem:[%s269_s3] sm:$0xff] %vm57_vm0, %v158_v41 }
 0x1d2   :  { %137 = vsyncpa [#allocation4], 1 }
 0x1d3   :  { %138 = vsyncpa [#allocation5], 1 }
 0x1d4   :  { %139 = vsyncpa [#allocation7], 1 }

</bundles_post_ra>
